<compile_context>
chip_gen: v7x
topology: tpu7x:2x2x1
jax: 0.10.0
libtpu: 0.0.40
codegen_flags: <defaults>
</compile_context>

<pallas_src>
import jax
import jax.numpy as jnp
from jax import lax
from jax.experimental import pallas as pl
from jax.experimental.pallas import tpu as pltpu

BN_EPS = 1e-5


# ---------------------------------------------------------------------------
# Kernel
# ---------------------------------------------------------------------------
def _mixer_block_kernel(x_ref, wt_ref, bt_ref, w1_ref, b1_ref, w2_ref, b2_ref,
                        o_ref):
    """One batch tile.  x_ref / o_ref: (TB, L, C).  Params are grid-invariant.

    wt_ref : (L, L)  time-mix weight with BN-time scale folded in
                     (rows = output time step, cols = input time step).
    bt_ref : (L, 1)  folded time-mix bias  (= W_time @ shift_t + b_time).
    w1_ref : (C, E)  feat weight 1 with BN-feat scale folded into its rows.
    b1_ref : (1, E)  folded feat bias 1    (= shift_f @ W1 + b1).
    w2_ref : (E, C), b2_ref : (1, C)       feat weight / bias 2 (unchanged).
    """
    tb, l, c = x_ref.shape
    cdt = wt_ref.dtype                      # matmul operand dtype (bf16 / f32)
    x = x_ref[...]                          # (TB, L, C), f32

    # ---------------- MLP_Time ----------------
    # x_time[b,l,c] = relu( sum_k W_eff[l,k] * x[b,k,c] + bias_t[l] )
    # Batched GEMM with the small weight replicated over the batch-tile dim:
    # the contraction runs over x's native sublane (L) axis, so there is NO
    # minor-dim (XLU) transpose on either side and the result lands directly
    # in (TB, L, C) layout for the residual add.
    w_b = jnp.broadcast_to(wt_ref[...][None], (tb, l, l))          # (TB, L, L)
    tt = lax.dot_general(w_b, x.astype(cdt),
                         dimension_numbers=(((2,), (1,)), ((0,), (0,))),
                         preferred_element_type=jnp.float32)       # (TB, L, C)
    x_time = jnp.maximum(tt + bt_ref[...], 0.0)                    # ReLU
    y = x + x_time                                                 # residual

    # ---------------- MLP_Feat ----------------
    # Merge (TB, L) -> one big-M 2-D GEMM per layer.  This reshape is a free
    # relayout when L is a multiple of the sublane count (8).
    y2 = y.reshape(tb * l, c)
    h = jnp.dot(y2.astype(cdt), w1_ref[...],
                preferred_element_type=jnp.float32) + b1_ref[...]  # (TB*L, E)
    h = jnp.maximum(h, 0.0)                                        # ReLU
    out = y2 + jnp.dot(h.astype(cdt), w2_ref[...],
                       preferred_element_type=jnp.float32) + b2_ref[...]

    o_ref[...] = out.reshape(tb, l, c).astype(o_ref.dtype)


# ---------------------------------------------------------------------------
# Wrapper helpers
# ---------------------------------------------------------------------------
def _fold_params(p, compute_dtype):
    """Fold eval-mode BatchNorm affines and linear biases into the weights."""
    L = p["w_time"].shape[0]
    C, _ = p["w1"].shape

    # MLP_Time BatchNorm2d(ts_length): per-time-step affine.
    scale_t = p["t_gamma"] * lax.rsqrt(p["t_rv"] + BN_EPS)          # (L, 1)
    shift_t = p["t_beta"] - p["t_rm"] * scale_t                     # (L, 1)
    w_t = p["w_time"] * scale_t.reshape(1, L)       # W_eff[l,k] = W[l,k]*s[k]
    bias_t = p["w_time"] @ shift_t + p["b_time"]                    # (L, 1)

    # MLP_Feat BatchNorm2d(in_channels): per-channel affine.
    scale_f = p["f_gamma"] * lax.rsqrt(p["f_rv"] + BN_EPS)          # (1, C)
    shift_f = p["f_beta"] - p["f_rm"] * scale_f                     # (1, C)
    b1 = shift_f @ p["w1"] + p["b1"]                                # (1, E)
    w1 = p["w1"] * scale_f.reshape(C, 1)            # W1_eff[c,e] = s[c]*W1[c,e]

    cd = compute_dtype
    return (w_t.astype(cd), bias_t.astype(jnp.float32),
            w1.astype(cd), b1.astype(jnp.float32),
            p["w2"].astype(cd), p["b2"].astype(jnp.float32))


def _vmem_capacity_bytes():
    """Generation-aware VMEM capacity; conservative fallback (v7x per-TC)."""
    try:
        return int(pltpu.get_tpu_info().vmem_capacity_bytes)
    except Exception:
        return 64 * 1024 * 1024


def _per_example_vmem_bytes(L, C, E, cd_bytes):
    """Approx. per-batch-element VMEM working set inside one grid step."""
    # f32: double-buffered in/out tiles + x_time, y, second-GEMM out + h
    f32_elems = 4 * L * C + 3 * L * C + L * E
    # compute-dtype: replicated time weight + casts of x, y, h
    cd_elems = L * L + 2 * L * C + L * E
    return 4 * f32_elems + cd_bytes * cd_elems


def _pick_batch_tile(B, L, C, E, cd_bytes, vmem_capacity):
    """Largest batch tile that fits ~1/4 of this generation's VMEM, while
    keeping >= 4 grid steps (>= 2 per v7x TensorCore) when the batch allows."""
    budget = vmem_capacity // 4
    tb = max(1, budget // max(_per_example_vmem_bytes(L, C, E, cd_bytes), 1))
    if B >= 4:
        tb = min(tb, B // 4)
    tb = min(tb, B)
    if tb >= 8:
        tb = (tb // 8) * 8            # sublane-friendly when possible (no floor)
    return int(max(tb, 1))


def _choose_tiling(B, tb_cap):
    """Prefer a tile size that divides B exactly (no batch padding, no wasted
    grid work); fall back to padding only when no reasonable divisor exists."""
    best = 1
    for d in range(1, min(tb_cap, B) + 1):
        if B % d == 0:
            best = d
    if best * 4 >= tb_cap:
        return best, B
    Bp = pl.cdiv(B, tb_cap) * tb_cap
    return tb_cap, Bp


# ---------------------------------------------------------------------------
# Wrapper
# ---------------------------------------------------------------------------
def mixer_block(x, params, *, block_batch=None, compute_dtype=jnp.bfloat16):
    """TSMixer Mixer_Block forward (eval mode).

    x: (B, L, C) float32.  params: dict of arrays (see init_params).
    compute_dtype: dtype for matmul operands (bf16 default for native MXU on
    v5e/v6e/v7x; accumulation, biases and residual adds stay f32 either way).
    """
    B, L, C = x.shape
    E = params["w1"].shape[1]

    w_t, bias_t, w1, b1, w2, b2 = _fold_params(params, compute_dtype)
    cd_bytes = jnp.dtype(compute_dtype).itemsize
    capacity = _vmem_capacity_bytes()

    if block_batch is None:
        tb_cap = _pick_batch_tile(B, L, C, E, cd_bytes, capacity)
    else:
        tb_cap = int(max(1, min(block_batch, B)))
    TB, Bp = _choose_tiling(B, tb_cap)
    if Bp != B:
        # Fallback only (padding rows compute garbage that is sliced off).
        x = jnp.pad(x, ((0, Bp - B), (0, 0), (0, 0)))
    grid = (Bp // TB,)

    # Grid-invariant parameters: constant index_map -> the pipeline elides
    # their re-fetch after the first grid step.
    def _param_spec(shape):
        return pl.BlockSpec(shape, lambda b, _n=len(shape): (0,) * _n)

    in_specs = [
        pl.BlockSpec((TB, L, C), lambda b: (b, 0, 0)),   # x batch tile
        _param_spec((L, L)), _param_spec((L, 1)),        # time mixing
        _param_spec((C, E)), _param_spec((1, E)),        # feat mixing 1
        _param_spec((E, C)), _param_spec((1, C)),        # feat mixing 2
    ]
    out_specs = pl.BlockSpec((TB, L, C), lambda b: (b, 0, 0))

    # VMEM accounting: working set (includes double-buffered tiles) + params
    # (x2 in case they are double-buffered) + slack.  Capped at 75% of this
    # generation's capacity so Mosaic keeps headroom for internal scratch.
    param_bytes = sum(int(a.size) * a.dtype.itemsize
                      for a in (w_t, bias_t, w1, b1, w2, b2))
    work_bytes = TB * _per_example_vmem_bytes(L, C, E, cd_bytes)
    vmem_limit = int(min(int(0.75 * capacity),
                         max(16 * 1024 * 1024,
                             work_bytes + 2 * param_bytes + (2 << 20))))

    cost = pl.CostEstimate(
        flops=int(2 * Bp * L * (L * C + 2 * C * E)),
        transcendentals=0,
        bytes_accessed=int(2 * Bp * L * C * 4 + param_bytes),
    )

    out = pl.pallas_call(
        _mixer_block_kernel,
        out_shape=jax.ShapeDtypeStruct((Bp, L, C), x.dtype),
        grid_spec=pltpu.PrefetchScalarGridSpec(
            num_scalar_prefetch=0,
            grid=grid,
            in_specs=in_specs,
            out_specs=out_specs,
        ),
        compiler_params=pltpu.CompilerParams(
            dimension_semantics=("parallel",),
            vmem_limit_bytes=vmem_limit,
        ),
        cost_estimate=cost,
    )(x, w_t, bias_t, w1, b1, w2, b2)

    return out[:B] if Bp != B else out


# ---------------------------------------------------------------------------
# Parameters & pure-JAX reference
# ---------------------------------------------------------------------------
def init_params(key, L, C, E):
    ks = jax.random.split(key, 12)
    return {
        # MLP_Time BatchNorm2d(ts_length) params / running stats, (L, 1)
        "t_gamma": jax.random.normal(ks[0], (L, 1), jnp.float32) * 0.1 + 1.0,
        "t_beta":  jax.random.normal(ks[1], (L, 1), jnp.float32) * 0.1,
        "t_rm":    jax.random.normal(ks[2], (L, 1), jnp.float32) * 0.1,
        "t_rv":    jnp.abs(jax.random.normal(ks[3], (L, 1), jnp.float32)) * 0.1 + 1.0,
        # time-mixing Linear(L, L); x_time = W @ x_norm + b
        "w_time":  jax.random.normal(ks[4], (L, L), jnp.float32) * (1.0 / jnp.sqrt(L)),
        "b_time":  jax.random.normal(ks[5], (L, 1), jnp.float32) * 0.1,
        # MLP_Feat BatchNorm2d(in_channels) params / running stats, (1, C)
        "f_gamma": jax.random.normal(ks[6], (1, C), jnp.float32) * 0.1 + 1.0,
        "f_beta":  jax.random.normal(ks[7], (1, C), jnp.float32) * 0.1,
        "f_rm":    jax.random.normal(ks[8], (1, C), jnp.float32) * 0.1,
        "f_rv":    jnp.abs(jax.random.normal(ks[9], (1, C), jnp.float32)) * 0.1 + 1.0,
        # feature MLP: Linear(C, E) then Linear(E, C), stored (in, out)
        "w1": jax.random.normal(ks[10], (C, E), jnp.float32) * (1.0 / jnp.sqrt(C)),
        "b1": jnp.zeros((1, E), jnp.float32),
        "w2": jax.random.normal(ks[11], (E, C), jnp.float32) * (1.0 / jnp.sqrt(E)),
        "b2": jnp.zeros((1, C), jnp.float32),
    }


def mixer_block_ref(x, p):
    """Pure-JAX reference of the same (eval-mode) forward pass."""
    # MLP_Time
    x_norm = (x - p["t_rm"][None]) * lax.rsqrt(p["t_rv"][None] + BN_EPS) \
             * p["t_gamma"][None] + p["t_beta"][None]
    x_time = jnp.einsum("lk,bkc->blc", p["w_time"], x_norm) + p["b_time"][None]
    y = x + jnp.maximum(x_time, 0.0)
    # MLP_Feat
    y_norm = (y - p["f_rm"][None]) * lax.rsqrt(p["f_rv"][None] + BN_EPS) \
             * p["f_gamma"][None] + p["f_beta"][None]
    h = jnp.maximum(jnp.einsum("blc,ce->ble", y_norm, p["w1"]) + p["b1"][None], 0.0)
    return y + jnp.einsum("ble,ec->blc", h, p["w2"]) + p["b2"][None]


if __name__ == "__main__":
    # batch, ts_length, in_channels, embed_dim — small, but enough batch that
    # the grid really tiles (TB=16 -> grid=(4,), no padding).
    B, L, C, E = 64, 8, 4, 32

    key = jax.random.PRNGKey(0)
    k_x, k_p = jax.random.split(key)
    x = jax.random.normal(k_x, (B, L, C), jnp.float32)
    params = init_params(k_p, L, C, E)

    ref = mixer_block_ref(x, params)

    # Default path: bf16 matmul operands (native MXU), f32 accumulation.
    out_bf16 = jax.block_until_ready(mixer_block(x, params))
    assert out_bf16.shape == (B, L, C)
    max_err = float(jnp.max(jnp.abs(out_bf16 - ref)))
    assert max_err < 0.3, f"bf16 path too far from reference: {max_err}"

    # f32 operands: tight match against the pure-JAX reference.
    out_f32 = jax.block_until_ready(
        mixer_block(x, params, compute_dtype=jnp.float32))
    assert jnp.allclose(out_f32, ref, atol=1e-4, rtol=1e-4), \
        "f32 path mismatch vs pure-JAX reference"

    print("KERNEL_OK")
</pallas_src>

<mosaic_0001>
module attributes {stable_mosaic.version = 11 : i64} {
  func.func @_mixer_block_kernel(%arg0: i32, %arg1: memref<16x8x4xf32, #tpu.memory_space<vmem>>, %arg2: memref<8x8xbf16, #tpu.memory_space<vmem>>, %arg3: memref<8x1xf32, #tpu.memory_space<vmem>>, %arg4: memref<4x32xbf16, #tpu.memory_space<vmem>>, %arg5: memref<1x32xf32, #tpu.memory_space<vmem>>, %arg6: memref<32x4xbf16, #tpu.memory_space<vmem>>, %arg7: memref<1x4xf32, #tpu.memory_space<vmem>>, %arg8: memref<16x8x4xf32, #tpu.memory_space<vmem>>) attributes {dimension_semantics = [#tpu.dimension_semantics<parallel>], iteration_bounds = array<i64: 4>, scalar_prefetch = 0 : i64, scratch_operands = 0 : i64, tpu.core_type = #tpu.core_type<tc>, window_params = [{transform_indices = @transform_0, window_bounds = array<i64: 16, 8, 4>}, {pipeline_mode = #tpu.pipeline_mode<synchronous>, transform_indices = @transform_1, window_bounds = array<i64: 8, 8>}, {pipeline_mode = #tpu.pipeline_mode<synchronous>, transform_indices = @transform_2, window_bounds = array<i64: 8, 1>}, {pipeline_mode = #tpu.pipeline_mode<synchronous>, transform_indices = @transform_3, window_bounds = array<i64: 4, 32>}, {pipeline_mode = #tpu.pipeline_mode<synchronous>, transform_indices = @transform_4, window_bounds = array<i64: 1, 32>}, {pipeline_mode = #tpu.pipeline_mode<synchronous>, transform_indices = @transform_5, window_bounds = array<i64: 32, 4>}, {pipeline_mode = #tpu.pipeline_mode<synchronous>, transform_indices = @transform_6, window_bounds = array<i64: 1, 4>}, {transform_indices = @transform_7, window_bounds = array<i64: 16, 8, 4>}]} {
    %c0 = arith.constant 0 : index
    %c0_0 = arith.constant 0 : index
    %c0_1 = arith.constant 0 : index
    %0 = vector.load %arg1[%c0, %c0_0, %c0_1] : memref<16x8x4xf32, #tpu.memory_space<vmem>>, vector<16x8x4xf32>
    %c0_2 = arith.constant 0 : index
    %c0_3 = arith.constant 0 : index
    %1 = vector.load %arg2[%c0_2, %c0_3] : memref<8x8xbf16, #tpu.memory_space<vmem>>, vector<8x8xbf16>
    %2 = vector.shape_cast %1 : vector<8x8xbf16> to vector<1x8x8xbf16>
    %3 = vector.shape_cast %2 : vector<1x8x8xbf16> to vector<1x8x8xbf16>
    %4 = vector.broadcast %3 : vector<1x8x8xbf16> to vector<16x8x8xbf16>
    %5 = arith.truncf %0 : vector<16x8x4xf32> to vector<16x8x4xbf16>
    %cst = arith.constant dense<0.000000e+00> : vector<16x8x4xf32>
    %6 = tpu.matmul %4, %5, %cst {dimension_numbers = #tpu.dot_dimension_numbers<[2], [1], [1], [2], [0, 0, 0, 1, 1, 2], [0], [0]>} : vector<16x8x8xbf16>, vector<16x8x4xbf16>, vector<16x8x4xf32> -> vector<16x8x4xf32>
    %c0_4 = arith.constant 0 : index
    %c0_5 = arith.constant 0 : index
    %7 = vector.load %arg3[%c0_4, %c0_5] : memref<8x1xf32, #tpu.memory_space<vmem>>, vector<8x1xf32>
    %8 = vector.shape_cast %7 : vector<8x1xf32> to vector<1x8x1xf32>
    %9 = vector.broadcast %8 : vector<1x8x1xf32> to vector<16x8x4xf32>
    %10 = arith.addf %6, %9 : vector<16x8x4xf32>
    %cst_6 = arith.constant 0.000000e+00 : f32
    %11 = vector.broadcast %cst_6 : f32 to vector<16x8x4xf32>
    %12 = arith.maximumf %10, %11 : vector<16x8x4xf32>
    %13 = arith.addf %0, %12 : vector<16x8x4xf32>
    %14 = vector.shape_cast %13 : vector<16x8x4xf32> to vector<128x4xf32>
    %15 = arith.truncf %14 : vector<128x4xf32> to vector<128x4xbf16>
    %c0_7 = arith.constant 0 : index
    %c0_8 = arith.constant 0 : index
    %16 = vector.load %arg4[%c0_7, %c0_8] : memref<4x32xbf16, #tpu.memory_space<vmem>>, vector<4x32xbf16>
    %cst_9 = arith.constant dense<0.000000e+00> : vector<128x32xf32>
    %17 = tpu.matmul %15, %16, %cst_9 {dimension_numbers = #tpu.dot_dimension_numbers<[1], [0], [0], [1], [0, 0, 1, 1], [], []>} : vector<128x4xbf16>, vector<4x32xbf16>, vector<128x32xf32> -> vector<128x32xf32>
    %c0_10 = arith.constant 0 : index
    %c0_11 = arith.constant 0 : index
    %18 = vector.load %arg5[%c0_10, %c0_11] : memref<1x32xf32, #tpu.memory_space<vmem>>, vector<1x32xf32>
    %19 = vector.broadcast %18 : vector<1x32xf32> to vector<128x32xf32>
    %20 = arith.addf %17, %19 : vector<128x32xf32>
    %cst_12 = arith.constant 0.000000e+00 : f32
    %21 = vector.broadcast %cst_12 : f32 to vector<128x32xf32>
    %22 = arith.maximumf %20, %21 : vector<128x32xf32>
    %23 = arith.truncf %22 : vector<128x32xf32> to vector<128x32xbf16>
    %c0_13 = arith.constant 0 : index
    %c0_14 = arith.constant 0 : index
    %24 = vector.load %arg6[%c0_13, %c0_14] : memref<32x4xbf16, #tpu.memory_space<vmem>>, vector<32x4xbf16>
    %cst_15 = arith.constant dense<0.000000e+00> : vector<128x4xf32>
    %25 = tpu.matmul %23, %24, %cst_15 {dimension_numbers = #tpu.dot_dimension_numbers<[1], [0], [0], [1], [0, 0, 1, 1], [], []>} : vector<128x32xbf16>, vector<32x4xbf16>, vector<128x4xf32> -> vector<128x4xf32>
    %26 = arith.addf %14, %25 : vector<128x4xf32>
    %c0_16 = arith.constant 0 : index
    %c0_17 = arith.constant 0 : index
    %27 = vector.load %arg7[%c0_16, %c0_17] : memref<1x4xf32, #tpu.memory_space<vmem>>, vector<1x4xf32>
    %28 = vector.broadcast %27 : vector<1x4xf32> to vector<128x4xf32>
    %29 = arith.addf %26, %28 : vector<128x4xf32>
    %30 = vector.shape_cast %29 : vector<128x4xf32> to vector<16x8x4xf32>
    %c0_18 = arith.constant 0 : index
    %c0_19 = arith.constant 0 : index
    %c0_20 = arith.constant 0 : index
    %31 = vector.load %arg8[%c0_18, %c0_19, %c0_20] : memref<16x8x4xf32, #tpu.memory_space<vmem>>, vector<16x8x4xf32>
    tpu.vector_store %arg8[%c0_18, %c0_19, %c0_20], %30 {strides = array<i32>} : memref<16x8x4xf32, #tpu.memory_space<vmem>>, vector<16x8x4xf32>,
    return
  }
  func.func @transform_0(%arg0: i32) -> (i32, i32, i32) {
    %c0_i32 = arith.constant 0 : i32
    %c0_i32_0 = arith.constant 0 : i32
    %c0_i32_1 = arith.constant 0 : i32
    return %arg0, %c0_i32, %c0_i32_0 : i32, i32, i32
  }
  func.func @transform_1(%arg0: i32) -> (i32, i32) {
    %c0_i32 = arith.constant 0 : i32
    %c0_i32_0 = arith.constant 0 : i32
    %c0_i32_1 = arith.constant 0 : i32
    return %c0_i32, %c0_i32_0 : i32, i32
  }
  func.func @transform_2(%arg0: i32) -> (i32, i32) {
    %c0_i32 = arith.constant 0 : i32
    %c0_i32_0 = arith.constant 0 : i32
    %c0_i32_1 = arith.constant 0 : i32
    return %c0_i32, %c0_i32_0 : i32, i32
  }
  func.func @transform_3(%arg0: i32) -> (i32, i32) {
    %c0_i32 = arith.constant 0 : i32
    %c0_i32_0 = arith.constant 0 : i32
    %c0_i32_1 = arith.constant 0 : i32
    return %c0_i32, %c0_i32_0 : i32, i32
  }
  func.func @transform_4(%arg0: i32) -> (i32, i32) {
    %c0_i32 = arith.constant 0 : i32
    %c0_i32_0 = arith.constant 0 : i32
    %c0_i32_1 = arith.constant 0 : i32
    return %c0_i32, %c0_i32_0 : i32, i32
  }
  func.func @transform_5(%arg0: i32) -> (i32, i32) {
    %c0_i32 = arith.constant 0 : i32
    %c0_i32_0 = arith.constant 0 : i32
    %c0_i32_1 = arith.constant 0 : i32
    return %c0_i32, %c0_i32_0 : i32, i32
  }
  func.func @transform_6(%arg0: i32) -> (i32, i32) {
    %c0_i32 = arith.constant 0 : i32
    %c0_i32_0 = arith.constant 0 : i32
    %c0_i32_1 = arith.constant 0 : i32
    return %c0_i32, %c0_i32_0 : i32, i32
  }
  func.func @transform_7(%arg0: i32) -> (i32, i32, i32) {
    %c0_i32 = arith.constant 0 : i32
    %c0_i32_0 = arith.constant 0 : i32
    %c0_i32_1 = arith.constant 0 : i32
    return %arg0, %c0_i32, %c0_i32_0 : i32, i32, i32
  }
}

</mosaic_0001>

<bundles_post_ra>
// kernel: tpu_custom_call.1
= control target key start
LH: loop header
LB: loop body
LE: loop exit
PB: predicated region body
PF: predicated region fallthrough
CT: control target
= control target key end

     0   :  { %s1760_s24 = smov 0   ;;  %s2133_s0 = inlined_call_operand.vmem [shape: f32[64,8,4], index: 0, kind: input, shape index: {}]   ;;  %s2134_s1 = inlined_call_operand.vmem [shape: bf16[8,8], index: 1, kind: input, shape index: {}]   ;;  %s2135_s2 = inlined_call_operand.vmem [shape: f32[8,1], index: 2, kind: input, shape index: {}]   ;;  %s2136_s3 = inlined_call_operand.vmem [shape: bf16[4,32], index: 3, kind: input, shape index: {}]   ;;  %s2137_s4 = inlined_call_operand.vmem [shape: f32[1,32], index: 4, kind: input, shape index: {}]   ;;  %s2138_s5 = inlined_call_operand.vmem [shape: bf16[32,4], index: 5, kind: input, shape index: {}]   ;;  %s2139_s6 = inlined_call_operand.vmem [shape: f32[1,4], index: 6, kind: input, shape index: {}]   ;;  %s2140_s7 = inlined_call_operand.vmem [shape: f32[64,8,4], index: 7, kind: output, shape index: {}]  }
   0x1 LB: > { %s1462_s25 = sadd.s32 4294967295, %s1715_s24   ;;  %p1466_p0 = scmp.ge.s32.totalorder %s1715_s24, 1  ;;  %s1715_s24 = sphi %s1760_s24, %s17_s24  }
   0x2   : > { %p238_p1 = scmp.lt.s32.totalorder %s1715_s24, 5 }
   0x4   : > { %p239_p2 = pnand %p1466_p0, %p238_p1 }
   0x5   : > { %s1467_s26 = sshll.u32 (!%p239_p2), %s1462_s25, 4  ;;  %v1717_v0 = vmov (!%p239_p2), 0.0   ;;  %v316_v1 = vld [vmem:[%s2135_s2] sm:$0xff] (!%p239_p2)  ;;  %vm1718_vm0 = vmmov (!%p239_p2), 0   ;;  %v1719_v2 = vmov (!%p239_p2), 0   ;;  %vm326_vm1 = vcmask (!%p239_p2), 1043456  }
   0x6   : > { %242 = sbr.rel (%p239_p2) target bundleno = 741 (0x2e5), region = 48  ;;  %1560 = vmatprep.subr.bf16.mxu0 (!%p239_p2), %v1717_v0  ;;  %1566 = vmatprep.subr.bf16.mxu1 (!%p239_p2), %v1717_v0  ;;  %p271_p3 = scmp.lt.s32.totalorder (!%p239_p2), %s1467_s26, 63  ;;  %v1812_v13 = vld [vmem:[%s2134_s1] sm:$0xf] (!%p239_p2)  ;;  %vm322_vm2 = vcmask (!%p239_p2), 64512   ;;  %vm1088_vm3 = vcmask (!%p239_p2), 1041408  }
   0x7   : > { %1562 = vmatprep.mubr.msk.bf16.mxu0 (!%p239_p2), %vm1718_vm0, %v1717_v0  ;;  %1568 = vmatprep.mubr.msk.bf16.mxu1 (!%p239_p2), %vm1718_vm0, %v1717_v0  ;;  %v1055_v52 = vld [vmem:[%s2136_s3] sm:$0x3] (!%p239_p2)  ;;  %vm1063_vm4 = vcmask (!%p239_p2), 31744   ;;  %vm1229_vm5 = vcmask (!%p239_p2), 261120  }
   0x8   : > { %1706 = vset.pattern.permute.xlu0 (!%p239_p2), %v1719_v2  ;;  %v1090_v53 = vsel (!%p239_p2), %vm1088_vm3, %v1055_v52, 0 }
   0x9   : > { %319 = vperm.xlu0 (!%p239_p2), %1706, %v316_v1  }
   0xd   : > { %s2142_s26 = smov (!%p271_p3, %s1467_s26), 63 }
   0xe   : > { %s1468_s29 = sshll.u32 %s2142_s26, 3 }
   0xf   : > { %s1785_s9 = scalar_lea.vmem %s2133_s0, %s1468_s29  ;;  %s2081_s25 = scalar_lea.vmem %s2140_s7, %s1468_s29 }
  0x10   : > { %v1788_v3 = vld [vmem:[%s1785_s9] sm:$0xff]  ;;  %v1791_v4 = vld [vmem:[%s1785_s9 + $0x8] sm:$0xff]  ;;  %v1794_v5 = vld [vmem:[%s1785_s9 + $0x10] sm:$0xff] }
  0x11   : > { %v300_v6 = vpack.c.bf16 %v1788_v3, %v1788_v3  ;;  %v301_v7 = vpack.c.bf16 %v1791_v4, %v1791_v4  ;;  %v302_v8 = vpack.c.bf16 %v1794_v5, %v1794_v5  ;;  %v1803_v9 = vld [vmem:[%s1785_s9 + $0x18] sm:$0xff]  ;;  %v1819_v16 = vld [vmem:[%s1785_s9 + $0x20] sm:$0xff]  ;;  %v1822_v17 = vld [vmem:[%s1785_s9 + $0x28] sm:$0xff] }
  0x12   : > { %v303_v10 = vpack.c.bf16 %v1803_v9, %v1803_v9  ;;  %v304_v18 = vpack.c.bf16 %v1819_v16, %v1819_v16  ;;  %v305_v19 = vpack.c.bf16 %v1822_v17, %v1822_v17  ;;  %v1841_v22 = vld [vmem:[%s1785_s9 + $0x30] sm:$0xff]  ;;  %v1844_v23 = vld [vmem:[%s1785_s9 + $0x38] sm:$0xff]  ;;  %v1863_v28 = vld [vmem:[%s1785_s9 + $0x40] sm:$0xff] }
  0x13   : > { %v328_v11 = vsel %vm326_vm1, %v300_v6, 0  ;;  %v371_v12 = vsel %vm326_vm1, %v301_v7, 0  ;;  %v414_v14 = vsel %vm326_vm1, %v302_v8, 0  ;;  %v306_v24 = vpack.c.bf16 %v1841_v22, %v1841_v22  ;;  %v1866_v29 = vld [vmem:[%s1785_s9 + $0x48] sm:$0xff]  ;;  %v1885_v34 = vld [vmem:[%s1785_s9 + $0x50] sm:$0xff]  ;;  %v1888_v35 = vld [vmem:[%s1785_s9 + $0x58] sm:$0xff] }
  0x14   : > { %1561 = vmatpush3.bf16.msra.mxu0 %v328_v11  ;;  %1567 = vmatpush3.bf16.msra.mxu1 %v371_v12  ;;  %v457_v15 = vsel %vm326_vm1, %v303_v10, 0  ;;  %v500_v20 = vsel %vm326_vm1, %v304_v18, 0  ;;  %v543_v21 = vsel %vm326_vm1, %v305_v19, 0  ;;  %v307_v25 = vpack.c.bf16 %v1844_v23, %v1844_v23  ;;  %v1907_v40 = vld [vmem:[%s1785_s9 + $0x60] sm:$0xff]  ;;  %v1910_v41 = vld [vmem:[%s1785_s9 + $0x68] sm:$0xff]  ;;  %v1929_v46 = vld [vmem:[%s1785_s9 + $0x70] sm:$0xff] }
  0x15   : > { %1572 = vmatprep.subr.bf16.mxu0 %v1717_v0  ;;  %1578 = vmatprep.subr.bf16.mxu1 %v1717_v0  ;;  %v586_v26 = vsel %vm326_vm1, %v306_v24, 0  ;;  %v308_v30 = vpack.c.bf16 %v1863_v28, %v1863_v28  ;;  %v309_v31 = vpack.c.bf16 %v1866_v29, %v1866_v29  ;;  %v310_v36 = vpack.c.bf16 %v1885_v34, %v1885_v34  ;;  %v1932_v47 = vld [vmem:[%s1785_s9 + $0x78] sm:$0xff] }
  0x16   : > { %v629_v27 = vsel %vm326_vm1, %v307_v25, 0  ;;  %v311_v37 = vpack.c.bf16 %v1888_v35, %v1888_v35  ;;  %v312_v42 = vpack.c.bf16 %v1907_v40, %v1907_v40  ;;  %v313_v43 = vpack.c.bf16 %v1910_v41, %v1910_v41 }
  0x17   : > { %1563 = vmatmul.mubr.msk.bf16.vlgmr.msra.gmra.mrb[0].mxu0 %vm322_vm2, %v1812_v13  ;;  %1569 = vmatmul.mubr.msk.bf16.vlgmr.msra.gmra.mrb[0].mxu1 %vm322_vm2, %v1812_v13  ;;  %v672_v32 = vsel %vm326_vm1, %v308_v30, 0  ;;  %v715_v33 = vsel %vm326_vm1, %v309_v31, 0  ;;  %v758_v38 = vsel %vm326_vm1, %v310_v36, 0  ;;  %v314_v48 = vpack.c.bf16 %v1929_v46, %v1929_v46 }
  0x18   : > { %1573 = vmatpush3.bf16.msra.mxu0 %v414_v14  ;;  %1579 = vmatpush3.bf16.msra.mxu1 %v457_v15  ;;  %v801_v39 = vsel %vm326_vm1, %v311_v37, 0  ;;  %v844_v44 = vsel %vm326_vm1, %v312_v42, 0  ;;  %v887_v45 = vsel %vm326_vm1, %v313_v43, 0  ;;  %v315_v49 = vpack.c.bf16 %v1932_v47, %v1932_v47 }
  0x19   : > { %1574 = vmatprep.mubr.msk.bf16.mxu0 %vm1718_vm0, %v1717_v0  ;;  %1580 = vmatprep.mubr.msk.bf16.mxu1 %vm1718_vm0, %v1717_v0  ;;  %v930_v50 = vsel %vm326_vm1, %v314_v48, 0 }
  0x1a   : > { %1584 = vmatprep.subr.bf16.mxu0 %v1717_v0  ;;  %1590 = vmatprep.subr.bf16.mxu1 %v1717_v0  ;;  %v973_v51 = vsel %vm326_vm1, %v315_v49, 0 }
  0x1f   : > { %1575 = vmatmul.mubr.msk.bf16.vlgmr.msra.gmra.mrb[4].mxu0 %vm322_vm2, %v1812_v13  ;;  %1581 = vmatmul.mubr.msk.bf16.vlgmr.msra.gmra.mrb[4].mxu1 %vm322_vm2, %v1812_v13 }
  0x20   : > { %1585 = vmatpush3.bf16.msra.mxu0 %v500_v20  ;;  %1591 = vmatpush3.bf16.msra.mxu1 %v543_v21 }
  0x21   : > { %1586 = vmatprep.mubr.msk.bf16.mxu0 %vm1718_vm0, %v1717_v0  ;;  %1592 = vmatprep.mubr.msk.bf16.mxu1 %vm1718_vm0, %v1717_v0 }
  0x22   : > { %1596 = vmatprep.subr.bf16.mxu0 %v1717_v0  ;;  %1602 = vmatprep.subr.bf16.mxu1 %v1717_v0 }
  0x27   : > { %1587 = vmatmul.mubr.msk.bf16.vlgmr.msra.gmra.mrb[8].mxu0 %vm322_vm2, %v1812_v13  ;;  %1593 = vmatmul.mubr.msk.bf16.vlgmr.msra.gmra.mrb[8].mxu1 %vm322_vm2, %v1812_v13 }
  0x28   : > { %1597 = vmatpush3.bf16.msra.mxu0 %v586_v26  ;;  %1603 = vmatpush3.bf16.msra.mxu1 %v629_v27 }
  0x29   : > { %1598 = vmatprep.mubr.msk.bf16.mxu0 %vm1718_vm0, %v1717_v0  ;;  %1604 = vmatprep.mubr.msk.bf16.mxu1 %vm1718_vm0, %v1717_v0 }
  0x2a   : > { %1608 = vmatprep.subr.bf16.mxu0 %v1717_v0  ;;  %1614 = vmatprep.subr.bf16.mxu1 %v1717_v0 }
  0x2f   : > { %1599 = vmatmul.mubr.msk.bf16.vlgmr.msra.gmra.mrb[12].mxu0 %vm322_vm2, %v1812_v13  ;;  %1605 = vmatmul.mubr.msk.bf16.vlgmr.msra.gmra.mrb[12].mxu1 %vm322_vm2, %v1812_v13 }
  0x30   : > { %1609 = vmatpush3.bf16.msra.mxu0 %v672_v32  ;;  %1615 = vmatpush3.bf16.msra.mxu1 %v715_v33 }
  0x31   : > { %1610 = vmatprep.mubr.msk.bf16.mxu0 %vm1718_vm0, %v1717_v0  ;;  %1616 = vmatprep.mubr.msk.bf16.mxu1 %vm1718_vm0, %v1717_v0 }
  0x32   : > { %1620 = vmatprep.subr.bf16.mxu0 %v1717_v0  ;;  %1626 = vmatprep.subr.bf16.mxu1 %v1717_v0 }
  0x37   : > { %1611 = vmatmul.mubr.msk.bf16.vlgmr.msra.gmra.mrb[16].mxu0 %vm322_vm2, %v1812_v13  ;;  %1617 = vmatmul.mubr.msk.bf16.vlgmr.msra.gmra.mrb[16].mxu1 %vm322_vm2, %v1812_v13 }
  0x38   : > { %1621 = vmatpush3.bf16.msra.mxu0 %v758_v38  ;;  %1627 = vmatpush3.bf16.msra.mxu1 %v801_v39 }
  0x39   : > { %1622 = vmatprep.mubr.msk.bf16.mxu0 %vm1718_vm0, %v1717_v0  ;;  %1628 = vmatprep.mubr.msk.bf16.mxu1 %vm1718_vm0, %v1717_v0 }
  0x3a   : > { %1632 = vmatprep.subr.bf16.mxu0 %v1717_v0  ;;  %1638 = vmatprep.subr.bf16.mxu1 %v1717_v0 }
  0x3f   : > { %1623 = vmatmul.mubr.msk.bf16.vlgmr.msra.gmra.mrb[20].mxu0 %vm322_vm2, %v1812_v13  ;;  %1629 = vmatmul.mubr.msk.bf16.vlgmr.msra.gmra.mrb[20].mxu1 %vm322_vm2, %v1812_v13 }
  0x40   : > { %1633 = vmatpush3.bf16.msra.mxu0 %v844_v44  ;;  %1639 = vmatpush3.bf16.msra.mxu1 %v887_v45 }
  0x41   : > { %1634 = vmatprep.mubr.msk.bf16.mxu0 %vm1718_vm0, %v1717_v0  ;;  %1640 = vmatprep.mubr.msk.bf16.mxu1 %vm1718_vm0, %v1717_v0 }
  0x42   : > { %1644 = vmatprep.subr.bf16.mxu0 %v1717_v0  ;;  %1650 = vmatprep.subr.bf16.mxu1 %v1717_v0 }
  0x47   : > { %1635 = vmatmul.mubr.msk.bf16.vlgmr.msra.gmra.mrb[24].mxu0 %vm322_vm2, %v1812_v13  ;;  %1641 = vmatmul.mubr.msk.bf16.vlgmr.msra.gmra.mrb[24].mxu1 %vm322_vm2, %v1812_v13 }
  0x48   : > { %1645 = vmatpush3.bf16.msra.mxu0 %v930_v50  ;;  %1651 = vmatpush3.bf16.msra.mxu1 %v973_v51 }
  0x49   : > { %1646 = vmatprep.mubr.msk.bf16.mxu0 %vm1718_vm0, %v1717_v0  ;;  %1652 = vmatprep.mubr.msk.bf16.mxu1 %vm1718_vm0, %v1717_v0 }
  0x4a   : > { %1694 = vmatprep.subr.msk.bf16.mxu0 %vm1088_vm3, %v1055_v52 }
  0x4f   : > { %1647 = vmatmul.mubr.msk.bf16.vlgmr.msra.gmra.mrb[28].mxu0 %vm322_vm2, %v1812_v13  ;;  %1653 = vmatmul.mubr.msk.bf16.vlgmr.msra.gmra.mrb[28].mxu1 %vm322_vm2, %v1812_v13 }
  0x50   : > { %1657 = vmatpush3.bf16.msra.mxu0 %v1090_v53 }
  0x88   : > { %v1965_v54 = vpop.permute.xlu0 %319 }
  0xea   : > { %v364_v55 = vpop.f32.mrb[0].mxu0  ;;  %v407_v56 = vpop.f32.mrb[0].mxu1 }
  0xeb   : > { %v1564_v57 = vpop.f32.mrb[1].mxu0  ;;  %v1570_v58 = vpop.f32.mrb[1].mxu1  ;;  %v365_v59 = vadd.f32 %v364_v55, %v1965_v54  ;;  %v408_v60 = vadd.f32 %v407_v56, %v1965_v54 }
  0xec   : > { %v367_v61 = vpop.f32.mrb[2].mxu0  ;;  %v410_v62 = vpop.f32.mrb[2].mxu1 }
  0xed   : > { %v1565_v63 = vpop.f32.mrb[3].mxu0  ;;  %v1571_v0 = vpop.f32.mrb[3].mxu1  ;;  %v1015_v1 = vmax.f32 %v365_v59, 0.0  ;;  %v1016_v2 = vmax.f32 %v408_v60, 0.0 }
  0xef   : > { %v1970_v6 = vadd.f32 %v1015_v1, %v1788_v3  ;;  %v1973_v7 = vadd.f32 %v1016_v2, %v1791_v4 }
  0xf1   : > { %v1047_v8 = vpack.c.bf16 %v1973_v7, %v1970_v6 }
  0xf2   : > { %v450_v10 = vpop.f32.mrb[4].mxu0  ;;  %v493_v11 = vpop.f32.mrb[4].mxu1 }
  0xf3   : > { %v451_v12 = vadd.f32 %v450_v10, %v1965_v54  ;;  %v494_v13 = vadd.f32 %v493_v11, %v1965_v54  ;;  %v1576_v14 = vpop.f32.mrb[5].mxu0  ;;  %v1582_v15 = vpop.f32.mrb[5].mxu1  ;;  %1658 = vmatprep.mubr.msk.bf16.mxu0 %vm1063_vm4, %v1047_v8 }
  0xf4   : > { %v453_v18 = vpop.f32.mrb[6].mxu0  ;;  %v496_v3 = vpop.f32.mrb[6].mxu1 }
  0xf5   : > { %v1017_v19 = vmax.f32 %v451_v12, 0.0  ;;  %v1018_v20 = vmax.f32 %v494_v13, 0.0  ;;  %v1577_v4 = vpop.f32.mrb[7].mxu0  ;;  %v1583_v21 = vpop.f32.mrb[7].mxu1 }
  0xf7   : > { %v1981_v24 = vadd.f32 %v1017_v19, %v1794_v5  ;;  %v1984_v25 = vadd.f32 %v1018_v20, %v1803_v9 }
  0xf9   : > { %v1048_v26 = vpack.c.bf16 %v1984_v25, %v1981_v24 }
  0xfa   : > { %v536_v27 = vpop.f32.mrb[8].mxu0  ;;  %v579_v30 = vpop.f32.mrb[8].mxu1 }
  0xfb   : > { %v537_v31 = vadd.f32 %v536_v27, %v1965_v54  ;;  %v580_v32 = vadd.f32 %v579_v30, %v1965_v54  ;;  %v1588_v33 = vpop.f32.mrb[9].mxu0  ;;  %v1594_v36 = vpop.f32.mrb[9].mxu1  ;;  %1659 = vmatmul.mubr.msk.bf16.vlgmr.msra.gmra.mrb[32].mxu0 %vm1063_vm4, %v1048_v26 }
  0xfc   : > { %v539_v37 = vpop.f32.mrb[10].mxu0  ;;  %v582_v38 = vpop.f32.mrb[10].mxu1 }
  0xfd   : > { %v1019_v5 = vmax.f32 %v537_v31, 0.0  ;;  %v1020_v39 = vmax.f32 %v580_v32, 0.0  ;;  %v1589_v42 = vpop.f32.mrb[11].mxu0  ;;  %v1595_v9 = vpop.f32.mrb[11].mxu1 }
  0xff   : > { %v1992_v43 = vadd.f32 %v1019_v5, %v1819_v16  ;;  %v1995_v44 = vadd.f32 %v1020_v39, %v1822_v17 }
 0x101   : > { %v1049_v45 = vpack.c.bf16 %v1995_v44, %v1992_v43 }
 0x102   : > { %v622_v48 = vpop.f32.mrb[12].mxu0  ;;  %v665_v49 = vpop.f32.mrb[12].mxu1 }
 0x103   : > { %v623_v50 = vadd.f32 %v622_v48, %v1965_v54  ;;  %v666_v51 = vadd.f32 %v665_v49, %v1965_v54  ;;  %v1600_v52 = vpop.f32.mrb[13].mxu0  ;;  %v1606_v53 = vpop.f32.mrb[13].mxu1  ;;  %1662 = vmatprep.mubr.msk.bf16.mxu0 %vm1063_vm4, %v1049_v45 }
 0x104   : > { %v625_v55 = vpop.f32.mrb[14].mxu0  ;;  %v668_v56 = vpop.f32.mrb[14].mxu1 }
 0x105   : > { %v1021_v16 = vmax.f32 %v623_v50, 0.0  ;;  %v1022_v57 = vmax.f32 %v666_v51, 0.0  ;;  %v1601_v58 = vpop.f32.mrb[15].mxu0  ;;  %v1607_v17 = vpop.f32.mrb[15].mxu1 }
 0x107   : > { %v2003_v59 = vadd.f32 %v1021_v16, %v1841_v22  ;;  %v2006_v60 = vadd.f32 %v1022_v57, %v1844_v23 }
 0x109   : > { %v1050_v61 = vpack.c.bf16 %v2006_v60, %v2003_v59 }
 0x10a   : > { %v708_v62 = vpop.f32.mrb[16].mxu0  ;;  %v751_v63 = vpop.f32.mrb[16].mxu1 }
 0x10b   : > { %v709_v0 = vadd.f32 %v708_v62, %v1965_v54  ;;  %v752_v1 = vadd.f32 %v751_v63, %v1965_v54  ;;  %v1612_v2 = vpop.f32.mrb[17].mxu0  ;;  %v1618_v8 = vpop.f32.mrb[17].mxu1  ;;  %1663 = vmatmul.mubr.msk.bf16.gmra.mrb[36].mxu0 %vm1063_vm4, %v1050_v61 }
 0x10c   : > { %v711_v10 = vpop.f32.mrb[18].mxu0  ;;  %v754_v11 = vpop.f32.mrb[18].mxu1 }
 0x10d   : > { %v1023_v22 = vmax.f32 %v709_v0, 0.0  ;;  %v1024_v12 = vmax.f32 %v752_v1, 0.0  ;;  %v1613_v13 = vpop.f32.mrb[19].mxu0  ;;  %v1619_v23 = vpop.f32.mrb[19].mxu1  ;;  %v1708_v11 = vld [vmem:[%s2138_s5 + $0x8] sm:$0xff]  }
 0x10f   : > { %v2014_v14 = vadd.f32 %v1023_v22, %v1863_v28  ;;  %v2017_v15 = vadd.f32 %v1024_v12, %v1866_v29 }
 0x111   : > { %v1051_v18 = vpack.c.bf16 %v2017_v15, %v2014_v14 }
 0x112   : > { %v794_v3 = vpop.f32.mrb[20].mxu0  ;;  %v837_v19 = vpop.f32.mrb[20].mxu1 }
 0x113   : > { %v795_v20 = vadd.f32 %v794_v3, %v1965_v54  ;;  %v838_v4 = vadd.f32 %v837_v19, %v1965_v54  ;;  %v1624_v21 = vpop.f32.mrb[21].mxu0  ;;  %v1630_v26 = vpop.f32.mrb[21].mxu1  ;;  %1666 = vmatprep.mubr.msk.bf16.mxu0 %vm1063_vm4, %v1051_v18 }
 0x114   : > { %v797_v27 = vpop.f32.mrb[22].mxu0  ;;  %v840_v30 = vpop.f32.mrb[22].mxu1 }
 0x115   : > { %v1025_v28 = vmax.f32 %v795_v20, 0.0  ;;  %v1026_v31 = vmax.f32 %v838_v4, 0.0  ;;  %v1625_v32 = vpop.f32.mrb[23].mxu0  ;;  %v1631_v29 = vpop.f32.mrb[23].mxu1 }
 0x117   : > { %v2025_v33 = vadd.f32 %v1025_v28, %v1885_v34  ;;  %v2028_v36 = vadd.f32 %v1026_v31, %v1888_v35 }
 0x119   : > { %v1052_v37 = vpack.c.bf16 %v2028_v36, %v2025_v33 }
 0x11a   : > { %v880_v38 = vpop.f32.mrb[24].mxu0  ;;  %v923_v5 = vpop.f32.mrb[24].mxu1 }
 0x11b   : > { %v881_v39 = vadd.f32 %v880_v38, %v1965_v54  ;;  %v924_v42 = vadd.f32 %v923_v5, %v1965_v54  ;;  %v1636_v9 = vpop.f32.mrb[25].mxu0  ;;  %v1642_v45 = vpop.f32.mrb[25].mxu1  ;;  %1667 = vmatmul.mubr.msk.bf16.gmra.mrb[40].mxu0 %vm1063_vm4, %v1052_v37 }
 0x11c   : > { %v883_v48 = vpop.f32.mrb[26].mxu0  ;;  %v926_v49 = vpop.f32.mrb[26].mxu1 }
 0x11d   : > { %v1027_v34 = vmax.f32 %v881_v39, 0.0  ;;  %v1028_v50 = vmax.f32 %v924_v42, 0.0  ;;  %v1637_v51 = vpop.f32.mrb[27].mxu0  ;;  %v1643_v35 = vpop.f32.mrb[27].mxu1 }
 0x11f   : > { %v2036_v52 = vadd.f32 %v1027_v34, %v1907_v40  ;;  %v2039_v53 = vadd.f32 %v1028_v50, %v1910_v41 }
 0x121   : > { %v1053_v55 = vpack.c.bf16 %v2039_v53, %v2036_v52 }
 0x122   : > { %v966_v56 = vpop.f32.mrb[28].mxu0  ;;  %v1009_v16 = vpop.f32.mrb[28].mxu1 }
 0x123   : > { %v967_v57 = vadd.f32 %v966_v56, %v1965_v54  ;;  %v1010_v58 = vadd.f32 %v1009_v16, %v1965_v54  ;;  %v1648_v17 = vpop.f32.mrb[29].mxu0  ;;  %v1654_v61 = vpop.f32.mrb[29].mxu1  ;;  %1670 = vmatprep.mubr.msk.bf16.mxu0 %vm1063_vm4, %v1053_v55  ;;  %v1707_v54 = vld [vmem:[%s2138_s5] sm:$0xff]  }
 0x124   : > { %v969_v62 = vpop.f32.mrb[30].mxu0  ;;  %v1012_v63 = vpop.f32.mrb[30].mxu1  ;;  %1674 = vmatprep.subr.bf16.mxu1 %v1707_v54 }
 0x125   : > { %v1029_v40 = vmax.f32 %v967_v57, 0.0  ;;  %v1030_v0 = vmax.f32 %v1010_v58, 0.0  ;;  %v1649_v1 = vpop.f32.mrb[31].mxu0  ;;  %v1655_v41 = vpop.f32.mrb[31].mxu1  ;;  %1675 = vmatpush3.bf16.msra.mxu1 %v1707_v54 }
 0x126   : > { %1676 = vmatprep.subr.bf16.mxu1 %v1708_v11 }
 0x127   : > { %v2047_v2 = vadd.f32 %v1029_v40, %v1929_v46  ;;  %v2050_v8 = vadd.f32 %v1030_v0, %v1932_v47  ;;  %v1487_v46 = vld [vmem:[%s2137_s4] ss:$0 sm:$0xff] }
 0x129   : > { %v1054_v10 = vpack.c.bf16 %v2050_v8, %v2047_v2  ;;  %1677 = vmatpush3.bf16.msra.mxu1 %v1708_v11 }
 0x12b   : > { %1671 = vmatmul.mubr.msk.bf16.gmra.mrb[44].mxu0 %vm1063_vm4, %v1054_v10 }
 0x1ce   : > { %v1660_v47 = vpop.f32.mrb[32].mxu0 }
 0x1cf   : > { %v1135_v22 = vadd.f32 %v1660_v47, %v1487_v46  ;;  %v1126_v12 = vpop.f32.mrb[33].mxu0 }
 0x1d0   : > { %v1127_v13 = vadd.f32 %v1487_v46, %v1126_v12  ;;  %v1661_v23 = vpop.f32.mrb[34].mxu0 }
 0x1d1   : > { %v1138_v18 = vadd.f32 %v1661_v23, %v1487_v46  ;;  %v1129_v3 = vpop.f32.mrb[35].mxu0  ;;  %v1191_v20 = vmax.f32 %v1135_v22, 0.0 }
 0x1d2   : > { %v1130_v19 = vadd.f32 %v1487_v46, %v1129_v3  ;;  %v1189_v21 = vmax.f32 %v1127_v13, 0.0 }
 0x1d3   : > { %v1192_v4 = vmax.f32 %v1138_v18, 0.0 }
 0x1d4   : > { %v1190_v26 = vmax.f32 %v1130_v19, 0.0 }
 0x1d5   : > { %v1206_v27 = vpack.c.bf16 %v1192_v4, %v1191_v20 }
 0x1d6   : > { %v1205_v30 = vpack.c.bf16 %v1190_v26, %v1189_v21  ;;  %v1506_v21 = vld [vmem:[%s2139_s6] ss:$0 sm:$0xff] }
 0x1d8   : > { %1678 = vmatprep.mubr.msk.bf16.mxu1 %vm1229_vm5, %v1205_v30 }
 0x1d9   : > { %1679 = vmatmul.mubr.msk.bf16.vlgmr.msra.gmra.mrb[32].mxu1 %vm1229_vm5, %v1206_v27 }
 0x1de   : > { %v1664_v28 = vpop.f32.mrb[36].mxu0 }
 0x1df   : > { %v1151_v31 = vadd.f32 %v1664_v28, %v1487_v46  ;;  %v1142_v32 = vpop.f32.mrb[37].mxu0 }
 0x1e0   : > { %v1143_v29 = vadd.f32 %v1487_v46, %v1142_v32  ;;  %v1665_v37 = vpop.f32.mrb[38].mxu0 }
 0x1e1   : > { %v1154_v38 = vadd.f32 %v1665_v37, %v1487_v46  ;;  %v1145_v5 = vpop.f32.mrb[39].mxu0  ;;  %v1195_v42 = vmax.f32 %v1151_v31, 0.0 }
 0x1e2   : > { %v1146_v39 = vadd.f32 %v1487_v46, %v1145_v5  ;;  %v1193_v45 = vmax.f32 %v1143_v29, 0.0 }
 0x1e3   : > { %v1196_v9 = vmax.f32 %v1154_v38, 0.0 }
 0x1e4   : > { %v1194_v48 = vmax.f32 %v1146_v39, 0.0 }
 0x1e5   : > { %v1208_v49 = vpack.c.bf16 %v1196_v9, %v1195_v42 }
 0x1e6   : > { %v1207_v34 = vpack.c.bf16 %v1194_v48, %v1193_v45 }
 0x1e8   : > { %1682 = vmatprep.mubr.msk.bf16.mxu1 %vm1229_vm5, %v1207_v34 }
 0x1e9   : > { %1683 = vmatmul.mubr.msk.bf16.gmra.mrb[36].mxu1 %vm1229_vm5, %v1208_v49 }
 0x1ee   : > { %v1668_v50 = vpop.f32.mrb[40].mxu0 }
 0x1ef   : > { %v1167_v51 = vadd.f32 %v1668_v50, %v1487_v46  ;;  %v1158_v35 = vpop.f32.mrb[41].mxu0 }
 0x1f0   : > { %v1159_v55 = vadd.f32 %v1487_v46, %v1158_v35  ;;  %v1669_v56 = vpop.f32.mrb[42].mxu0 }
 0x1f1   : > { %v1170_v16 = vadd.f32 %v1669_v56, %v1487_v46  ;;  %v1161_v57 = vpop.f32.mrb[43].mxu0  ;;  %v1199_v17 = vmax.f32 %v1167_v51, 0.0 }
 0x1f2   : > { %v1162_v58 = vadd.f32 %v1487_v46, %v1161_v57  ;;  %v1197_v62 = vmax.f32 %v1159_v55, 0.0 }
 0x1f3   : > { %v1200_v61 = vmax.f32 %v1170_v16, 0.0 }
 0x1f4   : > { %v1198_v63 = vmax.f32 %v1162_v58, 0.0 }
 0x1f5   : > { %v1210_v40 = vpack.c.bf16 %v1200_v61, %v1199_v17 }
 0x1f6   : > { %v1209_v0 = vpack.c.bf16 %v1198_v63, %v1197_v62 }
 0x1f8   : > { %1686 = vmatprep.mubr.msk.bf16.mxu1 %vm1229_vm5, %v1209_v0 }
 0x1f9   : > { %1687 = vmatmul.mubr.msk.bf16.gmra.mrb[40].mxu1 %vm1229_vm5, %v1210_v40 }
 0x1fe   : > { %v1672_v1 = vpop.f32.mrb[44].mxu0 }
 0x1ff   : > { %v1183_v41 = vadd.f32 %v1672_v1, %v1487_v46  ;;  %v1174_v10 = vpop.f32.mrb[45].mxu0 }
 0x200   : > { %v1175_v54 = vadd.f32 %v1487_v46, %v1174_v10  ;;  %v1673_v11 = vpop.f32.mrb[46].mxu0 }
 0x201   : > { %v1186_v47 = vadd.f32 %v1673_v11, %v1487_v46  ;;  %v1177_v22 = vpop.f32.mrb[47].mxu0  ;;  %v1203_v13 = vmax.f32 %v1183_v41, 0.0 }
 0x202   : > { %v1178_v12 = vadd.f32 %v1487_v46, %v1177_v22  ;;  %v1201_v18 = vmax.f32 %v1175_v54, 0.0 }
 0x203   : > { %v1204_v23 = vmax.f32 %v1186_v47, 0.0 }
 0x204   : > { %v1202_v3 = vmax.f32 %v1178_v12, 0.0 }
 0x205   : > { %v1212_v19 = vpack.c.bf16 %v1204_v23, %v1203_v13 }
 0x206   : > { %v1211_v20 = vpack.c.bf16 %v1202_v3, %v1201_v18 }
 0x208   : > { %1690 = vmatprep.mubr.msk.bf16.mxu1 %vm1229_vm5, %v1211_v20 }
 0x209   : > { %1691 = vmatmul.mubr.msk.bf16.gmra.mrb[44].mxu1 %vm1229_vm5, %v1212_v19 }
 0x2ac   : > { %v1680_v4 = vpop.f32.mrb[32].mxu1 }
 0x2ad   : > { %v1353_v26 = vadd.f32 %v1680_v4, %v1981_v24  ;;  %v1288_v27 = vpop.f32.mrb[33].mxu1 }
 0x2ae   : > { %v1351_v46 = vadd.f32 %v1288_v27, %v1970_v6  ;;  %v1681_v30 = vpop.f32.mrb[34].mxu1 }
 0x2af   : > { %v1376_v28 = vadd.f32 %v1506_v21, %v1353_v26  ;;  %v1354_v31 = vadd.f32 %v1681_v30, %v1984_v25  ;;  %v1291_v32 = vpop.f32.mrb[35].mxu1 }
 0x2b0   : > { %v1374_v29 = vadd.f32 %v1506_v21, %v1351_v46  ;;  %v1352_v24 = vadd.f32 %v1291_v32, %v1973_v7 }
 0x2b1   : > { %1392 = vst.msk [vmem:[%s2081_s25 + $0x10] sm:$0xff] %vm1063_vm4, %v1376_v28  ;;  %v1377_v37 = vadd.f32 %v1506_v21, %v1354_v31 }
 0x2b2   : > { %1390 = vst.msk [vmem:[%s2081_s25] sm:$0xff] %vm1063_vm4, %v1374_v29  ;;  %v1375_v38 = vadd.f32 %v1506_v21, %v1352_v24 }
 0x2b3   : > { %1393 = vst.msk [vmem:[%s2081_s25 + $0x18] sm:$0xff] %vm1063_vm4, %v1377_v37 }
 0x2b4   : > { %1391 = vst.msk [vmem:[%s2081_s25 + $0x8] sm:$0xff] %vm1063_vm4, %v1375_v38 }
 0x2bc   : > { %v1684_v6 = vpop.f32.mrb[36].mxu1 }
 0x2bd   : > { %v1357_v25 = vadd.f32 %v1684_v6, %v2003_v59  ;;  %v1304_v5 = vpop.f32.mrb[37].mxu1 }
 0x2be   : > { %v1355_v7 = vadd.f32 %v1304_v5, %v1992_v43  ;;  %v1685_v39 = vpop.f32.mrb[38].mxu1 }
 0x2bf   : > { %v1380_v42 = vadd.f32 %v1506_v21, %v1357_v25  ;;  %v1358_v9 = vadd.f32 %v1685_v39, %v2006_v60  ;;  %v1307_v45 = vpop.f32.mrb[39].mxu1 }
 0x2c0   : > { %v1378_v48 = vadd.f32 %v1506_v21, %v1355_v7  ;;  %v1356_v49 = vadd.f32 %v1307_v45, %v1995_v44 }
 0x2c1   : > { %1396 = vst.msk [vmem:[%s2081_s25 + $0x30] sm:$0xff] %vm1063_vm4, %v1380_v42  ;;  %v1381_v34 = vadd.f32 %v1506_v21, %v1358_v9 }
 0x2c2   : > { %1394 = vst.msk [vmem:[%s2081_s25 + $0x20] sm:$0xff] %vm1063_vm4, %v1378_v48  ;;  %v1379_v50 = vadd.f32 %v1506_v21, %v1356_v49 }
 0x2c3   : > { %1397 = vst.msk [vmem:[%s2081_s25 + $0x38] sm:$0xff] %vm1063_vm4, %v1381_v34 }
 0x2c4   : > { %1395 = vst.msk [vmem:[%s2081_s25 + $0x28] sm:$0xff] %vm1063_vm4, %v1379_v50 }
 0x2cc   : > { %v1688_v43 = vpop.f32.mrb[40].mxu1 }
 0x2cd   : > { %v1361_v59 = vadd.f32 %v1688_v43, %v2025_v33  ;;  %v1320_v60 = vpop.f32.mrb[41].mxu1 }
 0x2ce   : > { %v1359_v44 = vadd.f32 %v1320_v60, %v2014_v14  ;;  %v1689_v51 = vpop.f32.mrb[42].mxu1 }
 0x2cf   : > { %v1384_v35 = vadd.f32 %v1506_v21, %v1361_v59  ;;  %v1362_v55 = vadd.f32 %v1689_v51, %v2028_v36  ;;  %v1323_v56 = vpop.f32.mrb[43].mxu1 }
 0x2d0   : > { %v1382_v16 = vadd.f32 %v1506_v21, %v1359_v44  ;;  %v1360_v57 = vadd.f32 %v1323_v56, %v2017_v15 }
 0x2d1   : > { %1400 = vst.msk [vmem:[%s2081_s25 + $0x50] sm:$0xff] %vm1063_vm4, %v1384_v35  ;;  %v1385_v58 = vadd.f32 %v1506_v21, %v1362_v55 }
 0x2d2   : > { %1398 = vst.msk [vmem:[%s2081_s25 + $0x40] sm:$0xff] %vm1063_vm4, %v1382_v16  ;;  %v1383_v17 = vadd.f32 %v1506_v21, %v1360_v57 }
 0x2d3   : > { %1401 = vst.msk [vmem:[%s2081_s25 + $0x58] sm:$0xff] %vm1063_vm4, %v1385_v58 }
 0x2d4   : > { %1399 = vst.msk [vmem:[%s2081_s25 + $0x48] sm:$0xff] %vm1063_vm4, %v1383_v17 }
 0x2dc   : > { %v1692_v14 = vpop.f32.mrb[44].mxu1 }
 0x2dd   : > { %v1365_v33 = vadd.f32 %v1692_v14, %v2047_v2  ;;  %v1336_v36 = vpop.f32.mrb[45].mxu1 }
 0x2de   : > { %v1363_v15 = vadd.f32 %v1336_v36, %v2036_v52  ;;  %v1693_v61 = vpop.f32.mrb[46].mxu1 }
 0x2df   : > { %v1388_v62 = vadd.f32 %v1506_v21, %v1365_v33  ;;  %v1366_v63 = vadd.f32 %v1693_v61, %v2050_v8  ;;  %v1339_v40 = vpop.f32.mrb[47].mxu1 }
 0x2e0   : > { %v1386_v0 = vadd.f32 %v1506_v21, %v1363_v15  ;;  %v1364_v1 = vadd.f32 %v1339_v40, %v2039_v53 }
 0x2e1   : > { %1404 = vst.msk [vmem:[%s2081_s25 + $0x70] sm:$0xff] %vm1063_vm4, %v1388_v62  ;;  %v1389_v41 = vadd.f32 %v1506_v21, %v1366_v63 }
 0x2e2   : > { %1402 = vst.msk [vmem:[%s2081_s25 + $0x60] sm:$0xff] %vm1063_vm4, %v1386_v0  ;;  %v1387_v10 = vadd.f32 %v1506_v21, %v1364_v1 }
 0x2e3   : > { %1405 = vst.msk [vmem:[%s2081_s25 + $0x78] sm:$0xff] %vm1063_vm4, %v1389_v41 }
 0x2e4   : > { %1403 = vst.msk [vmem:[%s2081_s25 + $0x68] sm:$0xff] %vm1063_vm4, %v1387_v10 }
 0x2e5 PF: > { %s17_s24 = sadd.s32 1, %s1715_s24  }
 0x2e6   : > { %p14_p4 = scmp.ge.s32.totalorder %s17_s24, 6  }
 0x2e8   :  { %16 = sbr.rel (!%p14_p4) target bundleno = 1 (0x1), region = 78 }

</bundles_post_ra>
